<compile_context>
chip_gen: v7x
topology: tpu7x:2x2x1
jax: 0.10.0
libtpu: 0.0.40
codegen_flags: <defaults>
</compile_context>

<pallas_src>
import functools
import math

import jax
import jax.numpy as jnp
from jax import lax
from jax.experimental import pallas as pl
from jax.experimental.pallas import tpu as pltpu


# -----------------------------------------------------------------------------
# Kernel: fused (x + y) -> LayerNorm over last dim, with affine gamma/beta.
# All statistics accumulate in f32 regardless of I/O dtype.
# -----------------------------------------------------------------------------
def _add_norm_kernel(x_ref, y_ref, g_ref, b_ref, o_ref, *, eps):
    # x/y: (tm, D) tile; g/b: (1, D) broadcast row.
    z = x_ref[...].astype(jnp.float32) + y_ref[...].astype(jnp.float32)
    mean = jnp.mean(z, axis=-1, keepdims=True)           # (tm, 1)
    c = z - mean
    var = jnp.mean(c * c, axis=-1, keepdims=True)         # biased var, like torch
    inv = lax.rsqrt(var + eps)
    g = g_ref[...].astype(jnp.float32)
    b = b_ref[...].astype(jnp.float32)
    o_ref[...] = ((c * inv) * g + b).astype(o_ref.dtype)


def _pick_row_tile(rows, d, itemsize, target_tile_bytes=4 * 1024 * 1024):
    """Row-tile size: ~target_tile_bytes per array tile, sublane-aligned."""
    sub = 16 if itemsize <= 2 else 8          # sublane packing multiple
    row_bytes = max(1, d * itemsize)
    tm_budget = (target_tile_bytes // row_bytes) // sub * sub
    tm_budget = max(sub, tm_budget)
    rows_rounded = pl.cdiv(rows, sub) * sub   # never exceed (rounded-up) rows
    return max(sub, min(tm_budget, rows_rounded))


def add_norm(x, y, gamma, beta, *, eps=1e-5):
    """LayerNorm(x + y) over the last dim. x, y: (..., D)."""
    assert x.shape == y.shape, "x and y must have identical shapes"
    orig_shape = x.shape
    d = orig_shape[-1]
    rows = math.prod(orig_shape[:-1]) if len(orig_shape) > 1 else 1

    x2 = x.reshape(rows, d)
    y2 = y.reshape(rows, d)

    itemsize = jnp.dtype(x.dtype).itemsize
    tm = _pick_row_tile(rows, d, itemsize)
    grid = (pl.cdiv(rows, tm),)               # partial last block is masked

    row_spec = pl.BlockSpec((tm, d), lambda i: (i, 0))
    vec_spec = pl.BlockSpec((1, d), lambda i: (0, 0))

    out = pl.pallas_call(
        functools.partial(_add_norm_kernel, eps=eps),
        out_shape=jax.ShapeDtypeStruct((rows, d), x.dtype),
        grid_spec=pltpu.PrefetchScalarGridSpec(
            num_scalar_prefetch=0,
            grid=grid,
            in_specs=[row_spec, row_spec, vec_spec, vec_spec],
            out_specs=row_spec,
        ),
        compiler_params=pltpu.CompilerParams(
            dimension_semantics=("parallel",),
            vmem_limit_bytes=48 * 1024 * 1024,
        ),
    )(x2, y2, gamma.reshape(1, d), beta.reshape(1, d))

    return out.reshape(orig_shape)


# -----------------------------------------------------------------------------
# Parameters: nn.LayerNorm defaults (weight = ones, bias = zeros, eps = 1e-5).
# -----------------------------------------------------------------------------
def init_params(embed_dim):
    return {
        "gamma": jnp.ones((embed_dim,), jnp.float32),
        "beta": jnp.zeros((embed_dim,), jnp.float32),
    }


if __name__ == "__main__":
    # Small shapes consistent with the module: (batch=2, seq=8, embed_dim=128).
    B, S, D = 2, 8, 128

    root = jax.random.PRNGKey(0)
    kx, ky = jax.random.split(root, 2)
    x = jax.random.normal(kx, (B, S, D), jnp.float32)
    y = jax.random.normal(ky, (B, S, D), jnp.float32)

    params = init_params(D)

    out = add_norm(x, y, params["gamma"], params["beta"])
    jax.block_until_ready(out)

    # Pure-JAX reference with identical semantics (torch.nn.LayerNorm).
    def ref_forward(x, y, gamma, beta, eps=1e-5):
        z = x + y
        mean = jnp.mean(z, axis=-1, keepdims=True)
        var = jnp.mean((z - mean) ** 2, axis=-1, keepdims=True)
        return (z - mean) / jnp.sqrt(var + eps) * gamma + beta

    ref = ref_forward(x, y, params["gamma"], params["beta"])
    assert out.shape == (B, S, D)
    assert jnp.allclose(out, ref, atol=1e-5, rtol=1e-5), "mismatch vs reference"

    # Also exercise the bf16 I/O path and a ragged row count (partial block).
    xb = x.astype(jnp.bfloat16)[:, :5, :]
    yb = y.astype(jnp.bfloat16)[:, :5, :]
    outb = add_norm(xb, yb, params["gamma"], params["beta"])
    jax.block_until_ready(outb)
    refb = ref_forward(xb.astype(jnp.float32), yb.astype(jnp.float32),
                       params["gamma"], params["beta"])
    assert outb.shape == (B, 5, D)
    assert jnp.allclose(outb.astype(jnp.float32), refb, atol=2e-2, rtol=2e-2), \
        "bf16 mismatch vs reference"

    print("KERNEL_OK")
</pallas_src>

<mosaic_0001>
module attributes {stable_mosaic.version = 11 : i64} {
  func.func @_add_norm_kernel(%arg0: i32, %arg1: memref<16x128xf32, #tpu.memory_space<vmem>>, %arg2: memref<16x128xf32, #tpu.memory_space<vmem>>, %arg3: memref<1x128xf32, #tpu.memory_space<vmem>>, %arg4: memref<1x128xf32, #tpu.memory_space<vmem>>, %arg5: memref<16x128xf32, #tpu.memory_space<vmem>>) attributes {dimension_semantics = [#tpu.dimension_semantics<parallel>], iteration_bounds = array<i64: 1>, scalar_prefetch = 0 : i64, scratch_operands = 0 : i64, tpu.core_type = #tpu.core_type<tc>, window_params = [{transform_indices = @transform_0, window_bounds = array<i64: 16, 128>}, {transform_indices = @transform_1, window_bounds = array<i64: 16, 128>}, {pipeline_mode = #tpu.pipeline_mode<synchronous>, transform_indices = @transform_2, window_bounds = array<i64: 1, 128>}, {pipeline_mode = #tpu.pipeline_mode<synchronous>, transform_indices = @transform_3, window_bounds = array<i64: 1, 128>}, {transform_indices = @transform_4, window_bounds = array<i64: 16, 128>}]} {
    %c0 = arith.constant 0 : index
    %c0_0 = arith.constant 0 : index
    %0 = vector.load %arg1[%c0, %c0_0] : memref<16x128xf32, #tpu.memory_space<vmem>>, vector<16x128xf32>
    %c0_1 = arith.constant 0 : index
    %c0_2 = arith.constant 0 : index
    %1 = vector.load %arg2[%c0_1, %c0_2] : memref<16x128xf32, #tpu.memory_space<vmem>>, vector<16x128xf32>
    %2 = arith.addf %0, %1 : vector<16x128xf32>
    %cst = arith.constant dense<0.000000e+00> : vector<16xf32>
    %3 = vector.multi_reduction <add>, %2, %cst [1] : vector<16x128xf32> to vector<16xf32>
    %4 = vector.shape_cast %3 : vector<16xf32> to vector<16x1xf32>
    %cst_3 = arith.constant 1.280000e+02 : f32
    %5 = vector.broadcast %cst_3 : f32 to vector<16x1xf32>
    %6 = arith.divf %4, %5 : vector<16x1xf32>
    %7 = vector.broadcast %6 : vector<16x1xf32> to vector<16x128xf32>
    %8 = arith.subf %2, %7 : vector<16x128xf32>
    %9 = arith.mulf %8, %8 : vector<16x128xf32>
    %cst_4 = arith.constant dense<0.000000e+00> : vector<16xf32>
    %10 = vector.multi_reduction <add>, %9, %cst_4 [1] : vector<16x128xf32> to vector<16xf32>
    %11 = vector.shape_cast %10 : vector<16xf32> to vector<16x1xf32>
    %cst_5 = arith.constant 1.280000e+02 : f32
    %12 = vector.broadcast %cst_5 : f32 to vector<16x1xf32>
    %13 = arith.divf %11, %12 : vector<16x1xf32>
    %cst_6 = arith.constant 9.99999974E-6 : f32
    %14 = vector.broadcast %cst_6 : f32 to vector<16x1xf32>
    %15 = arith.addf %13, %14 : vector<16x1xf32>
    %16 = math.rsqrt %15 : vector<16x1xf32>
    %c0_7 = arith.constant 0 : index
    %c0_8 = arith.constant 0 : index
    %17 = vector.load %arg3[%c0_7, %c0_8] : memref<1x128xf32, #tpu.memory_space<vmem>>, vector<1x128xf32>
    %c0_9 = arith.constant 0 : index
    %c0_10 = arith.constant 0 : index
    %18 = vector.load %arg4[%c0_9, %c0_10] : memref<1x128xf32, #tpu.memory_space<vmem>>, vector<1x128xf32>
    %19 = vector.broadcast %16 : vector<16x1xf32> to vector<16x128xf32>
    %20 = arith.mulf %8, %19 : vector<16x128xf32>
    %21 = vector.broadcast %17 : vector<1x128xf32> to vector<16x128xf32>
    %22 = arith.mulf %20, %21 : vector<16x128xf32>
    %23 = vector.broadcast %18 : vector<1x128xf32> to vector<16x128xf32>
    %24 = arith.addf %22, %23 : vector<16x128xf32>
    %c0_11 = arith.constant 0 : index
    %c0_12 = arith.constant 0 : index
    %25 = vector.load %arg5[%c0_11, %c0_12] : memref<16x128xf32, #tpu.memory_space<vmem>>, vector<16x128xf32>
    tpu.vector_store %arg5[%c0_11, %c0_12], %24 {strides = array<i32>} : memref<16x128xf32, #tpu.memory_space<vmem>>, vector<16x128xf32>,
    return
  }
  func.func @transform_0(%arg0: i32) -> (i32, i32) {
    %c0_i32 = arith.constant 0 : i32
    %c0_i32_0 = arith.constant 0 : i32
    return %arg0, %c0_i32 : i32, i32
  }
  func.func @transform_1(%arg0: i32) -> (i32, i32) {
    %c0_i32 = arith.constant 0 : i32
    %c0_i32_0 = arith.constant 0 : i32
    return %arg0, %c0_i32 : i32, i32
  }
  func.func @transform_2(%arg0: i32) -> (i32, i32) {
    %c0_i32 = arith.constant 0 : i32
    %c0_i32_0 = arith.constant 0 : i32
    %c0_i32_1 = arith.constant 0 : i32
    return %c0_i32, %c0_i32_0 : i32, i32
  }
  func.func @transform_3(%arg0: i32) -> (i32, i32) {
    %c0_i32 = arith.constant 0 : i32
    %c0_i32_0 = arith.constant 0 : i32
    %c0_i32_1 = arith.constant 0 : i32
    return %c0_i32, %c0_i32_0 : i32, i32
  }
  func.func @transform_4(%arg0: i32) -> (i32, i32) {
    %c0_i32 = arith.constant 0 : i32
    %c0_i32_0 = arith.constant 0 : i32
    return %arg0, %c0_i32 : i32, i32
  }
}

</mosaic_0001>

<bundles_post_ra>
// kernel: tpu_custom_call.1
= control target key start
LH: loop header
LB: loop body
LE: loop exit
PB: predicated region body
PF: predicated region fallthrough
CT: control target
= control target key end

     0   :  { %9 = vsyncpa [#allocation3], 0  ;;  %s277_s0 = inlined_call_operand.hbm [shape: f32[16,128], index: 0, kind: input, shape index: {}]   ;;  %s278_s1 = inlined_call_operand.hbm [shape: f32[16,128], index: 1, kind: input, shape index: {}]   ;;  %s279_s2 = inlined_call_operand.vmem [shape: f32[1,128], index: 2, kind: input, shape index: {}]   ;;  %s280_s3 = inlined_call_operand.vmem [shape: f32[1,128], index: 3, kind: input, shape index: {}]   ;;  %s281_s4 = inlined_call_operand.hbm [shape: f32[16,128], index: 4, kind: output, shape index: {}]  }
   0x1   :  { %10 = vsyncpa [#allocation6], 0 }
   0x2   :  { %11 = vsyncpa [#allocation4], 0  ;;  %s196_s15 = smov [#allocation2]   ;;  %s124_s19 = scalar_lea.hbm %s277_s0, 256 }
   0x3   :  { %s17_s16 = sshll.u32 %s196_s15, 4  ;;  %p125_p0 = scmp.ne.s32.totalorder %s277_s0, %s124_s19  ;;  %s18_s16 = int_to_ptr.vmem [resolvable:$true] %s17_s16 }
   0x4   :  { %p128_p1 = scmp.lt.u32.totalorder %s124_s19, %s277_s0 }
   0x6   :  { %p130_p2 = pnand %p128_p1, %p125_p0 }
   0x8   :  { %133 = shalt.err (!%p130_p2)
}
   0x9   :  { %s134_s24 = scalar_lea.vmem %s18_s16, 256  ;;  %p139_p4 = scmp.lt.s32.totalorder %s18_s16, %s18_s16 }
   0xa   :  { %p135_p3 = scmp.ne.s32.totalorder %s18_s16, %s134_s24  ;;  %p140_p5 = scmp.lt.s32.totalorder %s134_s24, %s134_s24 }
   0xc   :  { %p141_p6 = por %p140_p5, %p139_p4 }
   0xe   :  { %p142_p7 = pnand %p141_p6, %p135_p3 }
  0x10   :  { %145 = shalt.err (!%p142_p7)
}
  0x11   :  { %s197_s25 = smov 128   ;;  %s198_s26 = smov 8  }
  0x12   :  { %23 = dma.hbm_to_vmem [thread:$0]  %s277_s0, 256, %s18_s16, [#allocation3], %s197_s25, %s197_s25, %s198_s26  }
  0x13   :  { %s199_s29 = smov [#allocation5]   ;;  %s146_s7 = scalar_lea.hbm %s278_s1, 256 }
  0x14   :  { %s29_s30 = sshll.u32 %s199_s29, 4  ;;  %p147_p8 = scmp.ne.s32.totalorder %s278_s1, %s146_s7  ;;  %s30_s30 = int_to_ptr.vmem [resolvable:$true] %s29_s30 }
  0x15   :  { %p150_p9 = scmp.lt.u32.totalorder %s146_s7, %s278_s1 }
  0x17   :  { %p152_p10 = pnand %p150_p9, %p147_p8 }
  0x19   :  { %155 = shalt.err (!%p152_p10)
}
  0x1a   :  { %s156_s12 = scalar_lea.vmem %s30_s30, 256  ;;  %p161_p12 = scmp.lt.s32.totalorder %s30_s30, %s30_s30 }
  0x1b   :  { %p157_p11 = scmp.ne.s32.totalorder %s30_s30, %s156_s12  ;;  %p162_p13 = scmp.lt.s32.totalorder %s156_s12, %s156_s12 }
  0x1d   :  { %p163_p0 = por %p162_p13, %p161_p12 }
  0x1f   :  { %p164_p1 = pnand %p163_p0, %p157_p11 }
  0x21   :  { %167 = shalt.err (!%p164_p1)
}
  0x22   :  { %35 = dma.hbm_to_vmem [thread:$0]  %s278_s1, 256, %s30_s30, [#allocation6], %s197_s25, %s197_s25, %s198_s26  }
  0x23   :  { %190 = dma.done.wait [#allocation3], 256  }
  0x24   :  { %191 = vsyncadd [#allocation3], 4294967040 }
  0x25   :  { %192 = dma.done.wait [#allocation6], 256  }
  0x26   :  { %193 = vsyncadd [#allocation6], 4294967040  ;;  %v46_v0 = vld [vmem:[#allocation2] sm:$0xff]  ;;  %v48_v1 = vld [vmem:[#allocation5] sm:$0xff]  ;;  %s200_s17 = smov [#allocation7]  }
  0x27   :  { %v47_v2 = vld [vmem:[#allocation2 + $0x8] sm:$0xff]  ;;  %v50_v3 = vadd.f32 %v48_v1, %v46_v0  ;;  %v49_v4 = vld [vmem:[#allocation5 + $0x8] sm:$0xff]  ;;  %v113_v21 = vld [vmem:[%s279_s2] ss:$0 sm:$0xff]  ;;  %s100_s18 = sshll.u32 %s200_s17, 4  ;;  %s101_s18 = int_to_ptr.vmem [resolvable:$true] %s100_s18 }
  0x28   :  { %v51_v5 = vadd.f32 %v49_v4, %v47_v2  ;;  %v114_v23 = vld [vmem:[%s280_s3] ss:$0 sm:$0xff]  ;;  %s168_s19 = scalar_lea.vmem %s101_s18, 256  ;;  %p173_p3 = scmp.lt.s32.totalorder %s101_s18, %s101_s18 }
  0x29   :  { %52 = vadd.xlane.f32.xlu0 %v50_v3  ;;  %p169_p2 = scmp.ne.s32.totalorder %s101_s18, %s168_s19  ;;  %p174_p4 = scmp.lt.s32.totalorder %s168_s19, %s168_s19 }
  0x2b   :  { %p175_p5 = por %p174_p4, %p173_p3 }
  0x2d   :  { %54 = vadd.xlane.f32.xlu0 %v51_v5  ;;  %p176_p6 = pnand %p175_p5, %p169_p2 }
  0xb6   :  { %v53_v6 = vpop.xlane.xlu0 %52 }
  0xb7   :  { %v57_v7 = vmul.f32 0.0078125, %v53_v6 }
  0xb9   :  { %v59_v8 = vsub.f32 %v50_v3, %v57_v7 }
  0xba   :  { %v55_v9 = vpop.xlane.xlu0 %54 }
  0xbb   :  { %v58_v10 = vmul.f32 0.0078125, %v55_v9  ;;  %v61_v11 = vmul.f32 %v59_v8, %v59_v8 }
  0xbd   :  { %v60_v12 = vsub.f32 %v51_v5, %v58_v10  ;;  %63 = vadd.xlane.f32.xlu1 %v61_v11 }
  0xbf   :  { %v62_v13 = vmul.f32 %v60_v12, %v60_v12 }
  0xc1   :  { %65 = vadd.xlane.f32.xlu1 %v62_v13 }
 0x14a   :  { %v64_v14 = vpop.xlane.xlu1 %63 }
 0x14b   :  { %v67_v15 = vmul.f32 0.0078125, %v64_v14 }
 0x14d   :  { %v69_v16 = vadd.f32 1e-05, %v67_v15 }
 0x14e   :  { %v66_v17 = vpop.xlane.xlu1 %65 }
 0x14f   :  { %120 = vrsqrt.f32 %v69_v16  ;;  %v68_v18 = vmul.f32 0.0078125, %v66_v17 }
 0x151   :  { %v70_v19 = vadd.f32 1e-05, %v68_v18 }
 0x153   :  { %122 = vrsqrt.f32 %v70_v19 }
 0x159   :  { %v121_v20 = vpop.eup %120 }
 0x15a   :  { %v75_v22 = vmul.f32 %v121_v20, %v59_v8 }
 0x15c   :  { %v83_v24 = vmul.f32 %v113_v21, %v75_v22 }
 0x15d   :  { %v123_v25 = vpop.eup %122 }
 0x15e   :  { %v76_v26 = vmul.f32 %v123_v25, %v60_v12  ;;  %v91_v27 = vadd.f32 %v114_v23, %v83_v24 }
 0x160   :  { %v84_v28 = vmul.f32 %v113_v21, %v76_v26  ;;  %93 = vst [vmem:[#allocation7] sm:$0xff] %v91_v27 }
 0x162   :  { %v92_v29 = vadd.f32 %v114_v23, %v84_v28 }
 0x164   :  { %94 = vst [vmem:[#allocation7 + $0x8] sm:$0xff] %v92_v29 }
 0x165   :  { %179 = shalt.err (!%p176_p6)
}
 0x166   :  { %s180_s20 = scalar_lea.hbm %s281_s4, 256 }
 0x167   :  { %p181_p7 = scmp.ne.s32.totalorder %s281_s4, %s180_s20  ;;  %p184_p8 = scmp.lt.u32.totalorder %s180_s20, %s281_s4 }
 0x169   :  { %p186_p9 = pnand %p184_p8, %p181_p7 }
 0x16b   :  { %189 = shalt.err (!%p186_p9)
}
 0x16c   :  { %106 = dma.vmem_to_hbm [thread:$0]  %s101_s18, 256, %s281_s4, [#allocation4], %s197_s25, %s197_s25, %s198_s26  }
 0x16d   :  { %194 = dma.done.wait [#allocation4], 256  }
 0x16e   :  { %195 = vsyncadd [#allocation4], 4294967040 }
 0x16f   :  { %110 = vsyncpa [#allocation3], 1 }
 0x170   :  { %111 = vsyncpa [#allocation6], 1 }
 0x171   :  { %112 = vsyncpa [#allocation4], 1 }

</bundles_post_ra>
